<compile_context>
chip_gen: v7x
topology: tpu7x:2x2x1
jax: 0.10.0
libtpu: 0.0.40
codegen_flags: <defaults>
</compile_context>

<pallas_src>
import numpy as np

import jax
import jax.numpy as jnp
from jax import lax
from jax.experimental import pallas as pl
from jax.experimental.pallas import tpu as pltpu


def _round_up(x: int, m: int) -> int:
    return ((x + m - 1) // m) * m


def _index_put_kernel(flags_ref, idx_ref, val_ref, inp_ref, out_ref):
    """One N-tile of: out = inp; out[index] = value (last write wins)."""
    i = pl.program_id(0)
    tile_n = out_ref.shape[1]

    # Fast path: no index targets this tile -> pure pipelined copy.
    @pl.when(flags_ref[i] == 0)
    def _copy():
        out_ref[...] = inp_ref[...]

    # Scatter path: vectorized last-write-wins select.
    @pl.when(flags_ref[i] != 0)
    def _scatter():
        mp = idx_ref.shape[0]
        start = i * tile_n
        # Global output-column ids covered by this tile, and scatter-order ids.
        pos = start + lax.broadcasted_iota(jnp.int32, (mp, tile_n), 1)
        row = lax.broadcasted_iota(jnp.int32, (mp, tile_n), 0)

        idx = idx_ref[...]                          # (Mp, 1) int32; pads = -1
        val = val_ref[...]                          # (Mp, 1) f32;   pads = 0

        mask = idx == pos                           # value i targets column n?
        prio = jnp.where(mask, row, -1)             # -1 == "no write"
        last = jnp.max(prio, axis=0, keepdims=True)          # (1, tile_n)
        is_last = prio == last                      # one-hot where last >= 0
        # Exactly one non-zero term per written column -> exact select via sum.
        scattered = jnp.sum(jnp.where(is_last, val, 0.0), axis=0, keepdims=True)
        out_ref[...] = jnp.where(last >= 0, scattered,
                                 inp_ref[...]).astype(out_ref.dtype)


def index_put_1d_float_nonaccumulate(inp, index, value, *, tile_n=None):
    """out = inp.clone(); out[index] = value  (accumulate=False semantics)."""
    n = int(inp.shape[0])
    m = int(index.shape[0])

    # --- index / value prep (tiny arrays; pad M to f32 sublane granularity 8).
    mp_pad = _round_up(max(m, 1), 8)
    idx = index.astype(jnp.int32)
    idx = jnp.where(idx < 0, idx + n, idx)                    # PyTorch wrap
    idx_p = jnp.pad(idx, (0, mp_pad - m), constant_values=-1).reshape(mp_pad, 1)
    val_p = jnp.pad(value.astype(inp.dtype), (0, mp_pad - m)).reshape(mp_pad, 1)

    # --- N tile size: keep each (Mp x tile_n) f32 temporary <= ~1 MiB.
    if tile_n is None:
        budget_elems = 256 * 1024
        tile_n = max(128, min(4096, (budget_elems // mp_pad) // 128 * 128))
    tile_n = int(min(tile_n, _round_up(n, 128)))
    num_tiles = int(pl.cdiv(n, tile_n))

    # --- per-tile "any write lands here" flags (scalar-prefetched into SMEM).
    valid = (idx >= 0) & (idx < n)
    tile_of = jnp.where(valid, idx // tile_n, num_tiles)      # OOB -> dropped
    flags = jnp.zeros((num_tiles,), jnp.int32).at[tile_of].add(1, mode="drop")

    inp2 = inp.reshape(1, n)                                  # metadata-only op

    out = pl.pallas_call(
        _index_put_kernel,
        out_shape=jax.ShapeDtypeStruct((1, n), inp.dtype),
        grid_spec=pltpu.PrefetchScalarGridSpec(
            num_scalar_prefetch=1,
            grid=(num_tiles,),
            in_specs=[
                pl.BlockSpec((mp_pad, 1), lambda i, flags: (0, 0)),   # index
                pl.BlockSpec((mp_pad, 1), lambda i, flags: (0, 0)),   # value
                pl.BlockSpec((1, tile_n), lambda i, flags: (0, i)),   # input
            ],
            out_specs=pl.BlockSpec((1, tile_n), lambda i, flags: (0, i)),
        ),
        compiler_params=pltpu.CompilerParams(
            dimension_semantics=("parallel",)),
    )(flags, idx_p, val_p, inp2)

    return out.reshape(n)


def _ref_index_put(inp, index, value):
    """Sequential reference: exact PyTorch index_put(accumulate=False) order."""
    n = inp.shape[0]
    ref = np.array(inp).copy()
    idx_np = np.array(index)
    val_np = np.array(value)
    for i in range(idx_np.shape[0]):
        j = int(idx_np[i])
        if j < 0:
            j += n
        ref[j] = val_np[i]
    return ref


if __name__ == "__main__":
    key = jax.random.PRNGKey(0)
    k1, k2, k3, k4, k5 = jax.random.split(key, 5)

    # --- Test 1: module-sized case (N=32, M=16) with a duplicate index
    #     (last-write-wins) and a negative index (PyTorch wrap-around).
    N, M = 32, 16
    inp = jax.random.normal(k1, (N,), dtype=jnp.float32)
    index = jax.random.randint(k2, (M,), 0, N, dtype=jnp.int32)
    index = index.at[5].set(index[2])      # force a duplicate
    index = index.at[9].set(-3)            # negative index
    value = jax.random.normal(k3, (M,), dtype=jnp.float32)

    out = jax.block_until_ready(index_put_1d_float_nonaccumulate(inp, index, value))
    np.testing.assert_allclose(np.array(out), _ref_index_put(inp, index, value),
                               rtol=0.0, atol=0.0)

    # --- Test 2: multi-tile path with a partial edge tile, write-free tiles
    #     (skip fast path) and duplicates in the last tile.
    N2, M2 = 1000, 12
    inp_b = jax.random.normal(k4, (N2,), dtype=jnp.float32)
    index_b = jnp.array([0, 3, 3, 999, 998, 5, 255, 100, -1, 999, 17, 2],
                        dtype=jnp.int32)
    value_b = jax.random.normal(k5, (M2,), dtype=jnp.float32)

    out_b = jax.block_until_ready(
        index_put_1d_float_nonaccumulate(inp_b, index_b, value_b, tile_n=256))
    np.testing.assert_allclose(np.array(out_b),
                               _ref_index_put(inp_b, index_b, value_b),
                               rtol=0.0, atol=0.0)

    print("KERNEL_OK")
</pallas_src>

<mosaic_0001>
module attributes {stable_mosaic.version = 11 : i64} {
  func.func @_index_put_kernel(%arg0: i32, %arg1: memref<1xi32, #tpu.memory_space<smem>>, %arg2: memref<16x1xi32, #tpu.memory_space<vmem>>, %arg3: memref<16x1xf32, #tpu.memory_space<vmem>>, %arg4: memref<1x128xf32, #tpu.memory_space<vmem>>, %arg5: memref<1x128xf32, #tpu.memory_space<vmem>>) attributes {dimension_semantics = [#tpu.dimension_semantics<parallel>], iteration_bounds = array<i64: 1>, scalar_prefetch = 1 : i64, scratch_operands = 0 : i64, tpu.core_type = #tpu.core_type<tc>, window_params = [{pipeline_mode = #tpu.pipeline_mode<synchronous>, transform_indices = @transform_0, window_bounds = array<i64: 16, 1>}, {pipeline_mode = #tpu.pipeline_mode<synchronous>, transform_indices = @transform_1, window_bounds = array<i64: 16, 1>}, {transform_indices = @transform_2, window_bounds = array<i64: 1, 128>}, {transform_indices = @transform_3, window_bounds = array<i64: 1, 128>}]} {
    %0 = arith.index_cast %arg0 : i32 to index
    %1 = memref.load %arg1[%0] : memref<1xi32, #tpu.memory_space<smem>>
    %c0_i32 = arith.constant 0 : i32
    %2 = arith.cmpi eq, %1, %c0_i32 : i32
    %3 = arith.extui %2 : i1 to i32
    %c0_i32_0 = arith.constant 0 : i32
    %4 = arith.cmpi ne, %3, %c0_i32_0 : i32
    scf.if %4 {
      %c0 = arith.constant 0 : index
      %c0_3 = arith.constant 0 : index
      %10 = vector.load %arg4[%c0, %c0_3] : memref<1x128xf32, #tpu.memory_space<vmem>>, vector<1x128xf32>
      %c0_4 = arith.constant 0 : index
      %c0_5 = arith.constant 0 : index
      %11 = vector.load %arg5[%c0_4, %c0_5] : memref<1x128xf32, #tpu.memory_space<vmem>>, vector<1x128xf32>
      tpu.vector_store %arg5[%c0_4, %c0_5], %10 {strides = array<i32>} : memref<1x128xf32, #tpu.memory_space<vmem>>, vector<1x128xf32>,
    } else {
    }
    %5 = arith.index_cast %arg0 : i32 to index
    %6 = memref.load %arg1[%5] : memref<1xi32, #tpu.memory_space<smem>>
    %c0_i32_1 = arith.constant 0 : i32
    %7 = arith.cmpi ne, %6, %c0_i32_1 : i32
    %8 = arith.extui %7 : i1 to i32
    %c0_i32_2 = arith.constant 0 : i32
    %9 = arith.cmpi ne, %8, %c0_i32_2 : i32
    scf.if %9 {
      %c128_i32 = arith.constant 128 : i32
      %10 = arith.muli %arg0, %c128_i32 : i32
      %11 = tpu.iota {dimensions = array<i32: 1>} : vector<16x128xi32>
      %12 = vector.broadcast %10 : i32 to vector<16x128xi32>
      %13 = arith.addi %12, %11 : vector<16x128xi32>
      %14 = tpu.iota {dimensions = array<i32: 0>} : vector<16x128xi32>
      %c0 = arith.constant 0 : index
      %c0_3 = arith.constant 0 : index
      %15 = vector.load %arg2[%c0, %c0_3] : memref<16x1xi32, #tpu.memory_space<vmem>>, vector<16x1xi32>
      %c0_4 = arith.constant 0 : index
      %c0_5 = arith.constant 0 : index
      %16 = vector.load %arg3[%c0_4, %c0_5] : memref<16x1xf32, #tpu.memory_space<vmem>>, vector<16x1xf32>
      %17 = vector.broadcast %15 : vector<16x1xi32> to vector<16x128xi32>
      %18 = arith.cmpi eq, %17, %13 : vector<16x128xi32>
      %c-1_i32 = arith.constant -1 : i32
      %19 = vector.broadcast %c-1_i32 : i32 to vector<16x128xi32>
      %20 = arith.select %18, %14, %19 : vector<16x128xi1>, vector<16x128xi32>
      %cst = arith.constant dense<-2147483648> : vector<128xi32>
      %21 = vector.multi_reduction <maxsi>, %20, %cst [0] : vector<16x128xi32> to vector<128xi32>
      %22 = vector.shape_cast %21 : vector<128xi32> to vector<1x128xi32>
      %23 = vector.broadcast %22 : vector<1x128xi32> to vector<16x128xi32>
      %24 = arith.cmpi eq, %20, %23 : vector<16x128xi32>
      %cst_6 = arith.constant 0.000000e+00 : f32
      %25 = vector.shape_cast %16 : vector<16x1xf32> to vector<16x1xf32>
      %26 = vector.broadcast %25 : vector<16x1xf32> to vector<16x128xf32>
      %27 = vector.broadcast %cst_6 : f32 to vector<16x128xf32>
      %28 = arith.select %24, %26, %27 : vector<16x128xi1>, vector<16x128xf32>
      %cst_7 = arith.constant dense<0.000000e+00> : vector<128xf32>
      %29 = vector.multi_reduction <add>, %28, %cst_7 [0] : vector<16x128xf32> to vector<128xf32>
      %30 = vector.shape_cast %29 : vector<128xf32> to vector<1x128xf32>
      %c0_i32_8 = arith.constant 0 : i32
      %31 = vector.broadcast %c0_i32_8 : i32 to vector<1x128xi32>
      %32 = arith.cmpi sge, %22, %31 : vector<1x128xi32>
      %c0_9 = arith.constant 0 : index
      %c0_10 = arith.constant 0 : index
      %33 = vector.load %arg4[%c0_9, %c0_10] : memref<1x128xf32, #tpu.memory_space<vmem>>, vector<1x128xf32>
      %34 = arith.select %32, %30, %33 : vector<1x128xi1>, vector<1x128xf32>
      %c0_11 = arith.constant 0 : index
      %c0_12 = arith.constant 0 : index
      %35 = vector.load %arg5[%c0_11, %c0_12] : memref<1x128xf32, #tpu.memory_space<vmem>>, vector<1x128xf32>
      tpu.vector_store %arg5[%c0_11, %c0_12], %34 {strides = array<i32>} : memref<1x128xf32, #tpu.memory_space<vmem>>, vector<1x128xf32>,
    } else {
    }
    return
  }
  func.func @transform_0(%arg0: i32, %arg1: memref<1xi32, #tpu.memory_space<smem>>) -> (i32, i32) {
    %c0_i32 = arith.constant 0 : i32
    %c0_i32_0 = arith.constant 0 : i32
    %c0_i32_1 = arith.constant 0 : i32
    return %c0_i32, %c0_i32_0 : i32, i32
  }
  func.func @transform_1(%arg0: i32, %arg1: memref<1xi32, #tpu.memory_space<smem>>) -> (i32, i32) {
    %c0_i32 = arith.constant 0 : i32
    %c0_i32_0 = arith.constant 0 : i32
    %c0_i32_1 = arith.constant 0 : i32
    return %c0_i32, %c0_i32_0 : i32, i32
  }
  func.func @transform_2(%arg0: i32, %arg1: memref<1xi32, #tpu.memory_space<smem>>) -> (i32, i32) {
    %c0_i32 = arith.constant 0 : i32
    %c0_i32_0 = arith.constant 0 : i32
    return %c0_i32, %arg0 : i32, i32
  }
  func.func @transform_3(%arg0: i32, %arg1: memref<1xi32, #tpu.memory_space<smem>>) -> (i32, i32) {
    %c0_i32 = arith.constant 0 : i32
    %c0_i32_0 = arith.constant 0 : i32
    return %c0_i32, %arg0 : i32, i32
  }
}

</mosaic_0001>

<bundles_post_ra>
// kernel: tpu_custom_call.1
= control target key start
LH: loop header
LB: loop body
LE: loop exit
PB: predicated region body
PF: predicated region fallthrough
CT: control target
= control target key end

     0   :  { %s191_s0 = inlined_call_operand.<no memory space> [shape: s32[1], index: 0, kind: input, shape index: {}]   ;;  %s192_s1 = inlined_call_operand.vmem [shape: s32[16,1], index: 1, kind: input, shape index: {}]   ;;  %s193_s2 = inlined_call_operand.vmem [shape: f32[16,1], index: 2, kind: input, shape index: {}]   ;;  %s194_s3 = inlined_call_operand.vmem [shape: f32[1,32], index: 3, kind: input, shape index: {}]   ;;  %s195_s4 = inlined_call_operand.hbm [shape: f32[1,32], index: 4, kind: output, shape index: {}]  }
   0x1   :  { %9 = sst [smem:[#allocation3]] %s191_s0 }
   0x2   :  { %10 = vsyncpa [#allocation5], 0  ;;  %s17_s17 = sld [smem:[#allocation3]] }
   0x8   :  { %p101_p0 = scmp.ne.s32.totalorder %s17_s17, 0 }
   0x9   :  { %v22_v0 = vld [vmem:[%s194_s3] sm:$0x1] (!%p101_p0) }
   0xa   :  { %21 = sbr.rel (%p101_p0) target bundleno = 17 (0x11), region = 17  ;;  %23 = vst [vmem:[#allocation4] sm:$0x1] (!%p101_p0), %v22_v0 }
  0x11 PF:  { %s24_s20 = sld [smem:[#allocation3]] }
  0x17   :  { %p102_p1 = scmp.eq.s32.totalorder %s24_s20, 0 }
  0x18   :  { %v37_v1 = vld [vmem:[%s192_s1] sm:$0xff] (!%p102_p1)  ;;  %v131_v3 = vmov (!%p102_p1), 0   ;;  %v38_v4 = vld [vmem:[%s192_s1 + $0x8] sm:$0xff] (!%p102_p1)  ;;  %v30_v6 = vlaneseq (!%p102_p1) }
  0x19   :  { %28 = sbr.rel (%p102_p1) target bundleno = 192 (0xc0), region = 21  ;;  %v39_v2 = vld [vmem:[%s193_s2] sm:$0xff] (!%p102_p1)  ;;  %105 = vset.pattern.permute.xlu0 (!%p102_p1), %v131_v3  ;;  %106 = vset.pattern.permute.xlu1 (!%p102_p1), %v131_v3  ;;  %v40_v5 = vld [vmem:[%s193_s2 + $0x8] sm:$0xff] (!%p102_p1) }
  0x1a   :  { %42 = vperm.xlu0 (!%p102_p1), %105, %v37_v1   ;;  %66 = vperm.xlu1 (!%p102_p1), %106, %v39_v2   ;;  %v31_v7 = vand.u32 (!%p102_p1), 127, %v30_v6  ;;  %v35_v9 = vshrl.u32 (!%p102_p1), %v30_v6, 7  ;;  %v84_v31 = vld [vmem:[%s194_s3] sm:$0x1] (!%p102_p1) }
  0x1c   :  { %v36_v10 = vadd.s32 (!%p102_p1), 8, %v35_v9 }
  0x1e   :  { %45 = vperm.xlu0 (!%p102_p1), %105, %v38_v4   ;;  %71 = vperm.xlu1 (!%p102_p1), %106, %v40_v5  }
  0x99   :  { %v43_v8 = vpop.permute.xlu0 %42  ;;  %v67_v18 = vpop.permute.xlu1 %66 }
  0x9a   :  { %vm47_vm0 = vcmp.eq.s32.totalorder %v43_v8, %v31_v7 }
  0x9b   :  { %v49_v12 = vsel %vm47_vm0, %v35_v9, 4294967295 }
  0x9d   :  { %v46_v11 = vpop.permute.xlu0 %45  ;;  %v72_v22 = vpop.permute.xlu1 %71 }
  0x9e   :  { %vm48_vm1 = vcmp.eq.s32.totalorder %v46_v11, %v31_v7 }
  0x9f   :  { %v50_v13 = vsel %vm48_vm1, %v36_v10, 4294967295 }
  0xa0   :  { %vm51_vm2 = vcmp.gt.s32.totalorder %v49_v12, %v50_v13 }
  0xa1   :  { %v52_v14 = vsel %vm51_vm2, %v49_v12, %v50_v13 }
  0xa2   :  { %v53_v15 = vrot.slane %v52_v14, 4 }
  0xa4   :  { %vm54_vm3 = vcmp.gt.s32.totalorder %v52_v14, %v53_v15 }
  0xa5   :  { %v55_v16 = vsel %vm54_vm3, %v52_v14, %v53_v15 }
  0xa6   :  { %v56_v17 = vrot.slane %v55_v16, 2 }
  0xa8   :  { %vm57_vm4 = vcmp.gt.s32.totalorder %v55_v16, %v56_v17 }
  0xa9   :  { %v58_v19 = vsel %vm57_vm4, %v55_v16, %v56_v17 }
  0xaa   :  { %v59_v20 = vrot.slane %v58_v19, 1 }
  0xac   :  { %vm60_vm5 = vcmp.gt.s32.totalorder %v58_v19, %v59_v20 }
  0xad   :  { %v61_v21 = vsel %vm60_vm5, %v58_v19, %v59_v20 }
  0xae   :  { %vm62_vm6 = vcmp.eq.s32.totalorder %v49_v12, %v61_v21  ;;  %vm63_vm7 = vcmp.eq.s32.totalorder %v50_v13, %v61_v21  ;;  %vm83_vm8 = vcmp.ge.s32.totalorder %v61_v21, 0 }
  0xaf   :  { %v74_v23 = vsel %vm62_vm6, %v67_v18, 0.0  ;;  %v75_v24 = vsel %vm63_vm7, %v72_v22, 0.0 }
  0xb0   :  { %v76_v25 = vadd.f32 %v75_v24, %v74_v23 }
  0xb2   :  { %v77_v26 = vrot.slane %v76_v25, 4 }
  0xb4   :  { %v78_v27 = vadd.f32 %v77_v26, %v76_v25 }
  0xb6   :  { %v79_v28 = vrot.slane %v78_v27, 2 }
  0xb8   :  { %v80_v29 = vadd.f32 %v79_v28, %v78_v27 }
  0xba   :  { %v81_v30 = vrot.slane %v80_v29, 1 }
  0xbc   :  { %v82_v32 = vadd.f32 %v81_v30, %v80_v29 }
  0xbe   :  { %v85_v33 = vsel %vm83_vm8, %v82_v32, %v84_v31 }
  0xbf   :  { %86 = vst [vmem:[#allocation4] sm:$0x1] %v85_v33 }
  0xc0 PF:  { %s132_s28 = smov [#allocation4]  }
  0xc1   :  { %s93_s29 = sshll.u32 %s132_s28, 4  ;;  %s94_s29 = int_to_ptr.vmem [resolvable:$true] %s93_s29 }
  0xc2   :  { %s107_s30 = scalar_lea.vmem %s94_s29, 16  ;;  %s111_s5 = scalar_lea.vmem %s94_s29, 32 }
  0xc3   :  { %p108_p2 = scmp.ne.s32.totalorder %s94_s29, %s107_s30  ;;  %p112_p3 = scmp.lt.s32.totalorder %s94_s29, %s94_s29 }
  0xc4   :  { %p113_p4 = scmp.lt.s32.totalorder %s111_s5, %s107_s30 }
  0xc6   :  { %p114_p5 = por %p113_p4, %p112_p3 }
  0xc8   :  { %p115_p6 = pnand %p114_p5, %p108_p2 }
  0xca   :  { %118 = shalt.err (!%p115_p6)
}
  0xcb   :  { %s119_s3 = scalar_lea.hbm %s195_s4, 16 }
  0xcc   :  { %p120_p7 = scmp.ne.s32.totalorder %s195_s4, %s119_s3  ;;  %p123_p8 = scmp.lt.u32.totalorder %s119_s3, %s195_s4 }
  0xce   :  { %p125_p9 = pnand %p123_p8, %p120_p7 }
  0xd0   :  { %128 = shalt.err (!%p125_p9)
}
  0xd1   :  { %96 = dma.vmem_to_hbm [thread:$0]  %s94_s29, 16, %s195_s4, [#allocation5]  }
  0xd2   :  { %129 = dma.done.wait [#allocation5], 16  }
  0xd3   :  { %130 = vsyncadd [#allocation5], 4294967280 }
  0xd4   :  { %100 = vsyncpa [#allocation5], 1 }

</bundles_post_ra>
